<compile_context>
chip_gen: v6e
topology: v6e:2x2x1
jax: 0.10.0
libtpu: 0.0.40
codegen_flags: <defaults>
</compile_context>

<pallas_src>
import jax
import jax.numpy as jnp
from jax import lax
from jax.experimental import pallas as pl
from jax.experimental.pallas import tpu as pltpu

# ---- model hyper-parameters (from the PyTorch module) ----
EMBEDDING_DIM = 1
HIDDEN_SIZE = 8
N_LAYERS = 3
DROPOUT_PROB = 0.2   # module's dropout; kernel runs in eval mode (identity)
LN_EPS = 1e-5

# ---- packed-parameter slab layout: one (48, H) f32 array, 8-row aligned matrices ----
ROW_WHH0 = 0     # rows  0..7 : layer-0 W_hh^T            (H, H)
ROW_WIH1 = 8     # rows  8..15: layer-1 W_ih^T            (H, H)
ROW_WHH1 = 16    # rows 16..23: layer-1 W_hh^T            (H, H)
ROW_WIH2 = 24    # rows 24..31: layer-2 W_ih^T            (H, H)
ROW_WHH2 = 32    # rows 32..39: layer-2 W_hh^T            (H, H)
ROW_W0 = 40      # row  40    : layer-0 W_ih^T (E == 1)   (1, H)
ROW_B0 = 41      # row  41    : layer-0 b_ih + b_hh       (1, H)
ROW_B1 = 42      # row  42    : layer-1 b_ih + b_hh       (1, H)
ROW_B2 = 43      # row  43    : layer-2 b_ih + b_hh       (1, H)
ROW_FCW = 44     # row  44    : gamma * fc_w  (LN affine folded)
ROW_FCB = 45     # row  45    : fc_b + beta . fc_w (broadcast across lanes)
PACKED_ROWS = 48

# Feedback #2: optional VPU/XLU matvec instead of MXU for the 8-wide contractions.
# TODO(synk): measure both paths per generation (bundle dump); MXU kept as default.
USE_VPU_MATVEC = False


def _small_dot(a, w):
    """(B, K) @ (K, N) for tiny K, N (K = N = 8 here)."""
    if USE_VPU_MATVEC:
        # VPU broadcast-multiply + sublane reduce; avoids the MXU push/pop round trip.
        return jnp.sum(a[:, :, None] * w[None, :, :], axis=1)
    return jnp.dot(a, w, preferred_element_type=jnp.float32)


def weather_kernel(x_ref, p_ref, out_ref):
    """Full forward pass for one batch block, entirely VMEM-resident.

    x_ref   : (B, T, 1)           raw input, batch-first (as the PyTorch module receives it)
    p_ref   : (PACKED_ROWS, H)    packed / pre-fused parameter slab (see layout above)
    out_ref : (B, 1)
    """
    B, T, _ = x_ref.shape
    H = HIDDEN_SIZE

    # --- loop-invariant parameter slices, read once (prologue, off the recurrence chain) ---
    whh0T = p_ref[ROW_WHH0:ROW_WHH0 + H, :]
    wih1T = p_ref[ROW_WIH1:ROW_WIH1 + H, :]
    whh1T = p_ref[ROW_WHH1:ROW_WHH1 + H, :]
    wih2T = p_ref[ROW_WIH2:ROW_WIH2 + H, :]
    whh2T = p_ref[ROW_WHH2:ROW_WHH2 + H, :]
    w0row = p_ref[ROW_W0:ROW_W0 + 1, :]                       # (1, H)
    # Biases hoisted and pre-broadcast to (B, H) once (no per-step broadcast_in_dim).
    bb0 = jnp.broadcast_to(p_ref[ROW_B0:ROW_B0 + 1, :], (B, H))
    bb1 = jnp.broadcast_to(p_ref[ROW_B1:ROW_B1 + 1, :], (B, H))
    bb2 = jnp.broadcast_to(p_ref[ROW_B2:ROW_B2 + 1, :], (B, H))
    fcw = p_ref[ROW_FCW:ROW_FCW + 1, :]                       # (1, H), gamma pre-folded
    fcb = p_ref[ROW_FCB:ROW_FCB + 1, 0:1]                     # (1, 1), beta pre-folded

    # Layer-0 input projection for all time steps at once: with E == 1 this is a single
    # VPU broadcast multiply, fully outside the recurrence.
    xproj = x_ref[...] * w0row.reshape(1, 1, H)               # (B, T, 1) * (1, 1, H) -> (B, T, H)

    # Un-fused recurrence. r_l holds the recurrent contribution (+ bias) for the *current*
    # step; it only depends on the same layer's previous hidden state, so it sits off the
    # layer-to-layer critical path. Critical path per hop: dot + add + tanh (T + L - 1 hops).
    r0, r1, r2 = bb0, bb1, bb2                                 # h(-1) == 0
    h2 = jnp.zeros((B, H), jnp.float32)
    for t in range(T):                                         # T is static -> fully unrolled
        h0 = jnp.tanh(xproj[:, t, :] + r0)
        h1 = jnp.tanh(_small_dot(h0, wih1T) + r1)
        h2 = jnp.tanh(_small_dot(h1, wih2T) + r2)
        if t + 1 < T:                                          # next-step recurrent terms
            r0 = _small_dot(h0, whh0T) + bb0
            r1 = _small_dot(h1, whh1T) + bb1
            r2 = _small_dot(h2, whh2T) + bb2

    # RNN output at the last step = top-layer hidden state at t = T-1.
    y = h2                                                     # (B, H)

    # LayerNorm (biased variance, matching torch.nn.LayerNorm); affine already folded into
    # fcw / fcb at prep time.
    mean = jnp.mean(y, axis=-1, keepdims=True)
    var = jnp.mean((y - mean) ** 2, axis=-1, keepdims=True)
    yn = (y - mean) * lax.rsqrt(var + LN_EPS)

    # Dropout: identity in eval mode.
    # TODO(synk): training-mode stochastic dropout (pltpu.prng_*) not implemented.

    # Final Linear as a pure lane reduction (no tail MXU dot, no weight transpose).
    out_ref[...] = jnp.sum(yn * fcw, axis=-1, keepdims=True) + fcb


def prepare_packed_params(p):
    """Pack all PyTorch-layout params into a single pre-transposed / pre-fused (48, H) slab."""
    H, L = HIDDEN_SIZE, N_LAYERS
    assert L == 3
    w0 = p["w_ih"][0].T.reshape(1, H)                          # (1, H), since E == 1
    b0 = (p["b_ih"][0] + p["b_hh"][0]).reshape(1, H)
    b1 = (p["b_ih"][1] + p["b_hh"][1]).reshape(1, H)
    b2 = (p["b_ih"][2] + p["b_hh"][2]).reshape(1, H)
    # Fold LayerNorm affine into the final Linear: fcw' = gamma * fcw, fcb' = fcb + beta . fcw
    fcw_row = p["fc_w"].reshape(1, H)                          # torch Linear weight (1, H)
    fcw_f = p["ln_w"].reshape(1, H) * fcw_row
    fcb_f = p["fc_b"].reshape(()) + jnp.sum(p["ln_b"] * p["fc_w"].reshape(H))
    fcb_row = jnp.broadcast_to(fcb_f.reshape(1, 1), (1, H))
    misc = jnp.concatenate(
        [w0, b0, b1, b2, fcw_f, fcb_row, jnp.zeros((2, H), jnp.float32)], axis=0)   # (8, H)
    packed = jnp.concatenate(
        [p["w_hh"][0].T, p["w_ih"][1].T, p["w_hh"][1].T,
         p["w_ih"][2].T, p["w_hh"][2].T, misc], axis=0).astype(jnp.float32)          # (48, H)
    assert packed.shape == (PACKED_ROWS, H)
    return packed


def weather_forecast(x, packed, *, batch_block=None):
    """x: (B, T, 1) float32, batch-first (like nn.RNN(batch_first=True)). Returns (B, 1).

    batch_block=None -> single program (everything VMEM-resident), best for tiny batches.
    batch_block=k (multiple of 8 dividing B) -> 1-D "parallel" grid over batch chunks so the
    work is sharded across both TensorCores on v7x.
    """
    B, T, E = x.shape
    assert E == EMBEDDING_DIM
    out_shape = jax.ShapeDtypeStruct((B, 1), jnp.float32)
    vmem = pltpu.MemorySpace.VMEM

    if batch_block is None or batch_block >= B:
        return pl.pallas_call(
            weather_kernel,
            out_shape=out_shape,
            in_specs=[pl.BlockSpec(memory_space=vmem),
                      pl.BlockSpec(memory_space=vmem)],
            out_specs=pl.BlockSpec(memory_space=vmem),
        )(x, packed)

    assert B % batch_block == 0 and batch_block % 8 == 0, "batch_block must be a multiple of 8"
    return pl.pallas_call(
        weather_kernel,
        out_shape=out_shape,
        grid=(B // batch_block,),
        in_specs=[pl.BlockSpec((batch_block, T, E), lambda i: (i, 0, 0)),
                  pl.BlockSpec((PACKED_ROWS, HIDDEN_SIZE), lambda i: (0, 0))],
        out_specs=pl.BlockSpec((batch_block, 1), lambda i: (i, 0)),
        compiler_params=pltpu.CompilerParams(dimension_semantics=("parallel",)),
    )(x, packed)


def init_params(key):
    """PyTorch-default-style init: U(-1/sqrt(H), 1/sqrt(H)) for RNN and Linear params."""
    H, L, E = HIDDEN_SIZE, N_LAYERS, EMBEDDING_DIM
    k = 1.0 / (H ** 0.5)
    keys = jax.random.split(key, 4 * L + 2)
    w_ih, w_hh, b_ih, b_hh = [], [], [], []
    for l in range(L):
        in_dim = E if l == 0 else H
        w_ih.append(jax.random.uniform(keys[4 * l + 0], (H, in_dim), jnp.float32, -k, k))
        w_hh.append(jax.random.uniform(keys[4 * l + 1], (H, H), jnp.float32, -k, k))
        b_ih.append(jax.random.uniform(keys[4 * l + 2], (H,), jnp.float32, -k, k))
        b_hh.append(jax.random.uniform(keys[4 * l + 3], (H,), jnp.float32, -k, k))
    fc_w = jax.random.uniform(keys[4 * L], (1, H), jnp.float32, -k, k)      # torch Linear (out, in)
    fc_b = jax.random.uniform(keys[4 * L + 1], (1,), jnp.float32, -k, k)
    return {
        "w_ih": w_ih, "w_hh": w_hh, "b_ih": b_ih, "b_hh": b_hh,
        "ln_w": jnp.ones((H,), jnp.float32), "ln_b": jnp.zeros((H,), jnp.float32),
        "fc_w": fc_w, "fc_b": fc_b,
    }


def reference_forward(x, p):
    """Pure-JAX reference of the same forward pass (PyTorch-layout params)."""
    B, T, E = x.shape
    H, L = HIDDEN_SIZE, N_LAYERS
    h = [jnp.zeros((B, H), jnp.float32) for _ in range(L)]
    for t in range(T):
        inp = x[:, t, :]
        for l in range(L):
            pre = (inp @ p["w_ih"][l].T + p["b_ih"][l]
                   + h[l] @ p["w_hh"][l].T + p["b_hh"][l])
            h[l] = jnp.tanh(pre)
            inp = h[l]
    y = h[L - 1]
    mean = jnp.mean(y, axis=-1, keepdims=True)
    var = jnp.mean((y - mean) ** 2, axis=-1, keepdims=True)
    y = (y - mean) / jnp.sqrt(var + LN_EPS)
    y = y * p["ln_w"] + p["ln_b"]
    return y @ p["fc_w"].T + p["fc_b"]


if __name__ == "__main__":
    key = jax.random.PRNGKey(0)
    k_param, k_x1, k_x2 = jax.random.split(key, 3)

    params = init_params(k_param)
    packed = prepare_packed_params(params)

    # Case 1: tiny batch (module's natural small shape), single program, no grid.
    B, T = 2, 8
    x = jax.random.normal(k_x1, (B, T, EMBEDDING_DIM), jnp.float32)
    out = jax.block_until_ready(weather_forecast(x, packed))
    ref = reference_forward(x, params)
    assert out.shape == (B, 1)
    assert jnp.allclose(out, ref, atol=1e-5, rtol=1e-5), (out, ref)

    # Case 2: larger batch sharded over a "parallel" grid axis (uses both TCs on v7x).
    B2 = 16
    x2 = jax.random.normal(k_x2, (B2, T, EMBEDDING_DIM), jnp.float32)
    out2 = jax.block_until_ready(weather_forecast(x2, packed, batch_block=8))
    ref2 = reference_forward(x2, params)
    assert out2.shape == (B2, 1)
    assert jnp.allclose(out2, ref2, atol=1e-5, rtol=1e-5), (out2, ref2)

    print("KERNEL_OK")
</pallas_src>

<mosaic_0001>
module attributes {stable_mosaic.version = 11 : i64} {
  func.func @weather_kernel(%arg0: memref<2x8x1xf32, #tpu.memory_space<vmem>>, %arg1: memref<48x8xf32, #tpu.memory_space<vmem>>, %arg2: memref<2x1xf32, #tpu.memory_space<vmem>>) attributes {dimension_semantics = [], scalar_prefetch = 0 : i64, scratch_operands = 0 : i64, tpu.core_type = #tpu.core_type<tc>} {
    %c0 = arith.constant 0 : index
    %c0_0 = arith.constant 0 : index
    %0 = vector.load %arg1[%c0, %c0_0] : memref<48x8xf32, #tpu.memory_space<vmem>>, vector<8x8xf32>
    %c8 = arith.constant 8 : index
    %c0_1 = arith.constant 0 : index
    %1 = vector.load %arg1[%c8, %c0_1] : memref<48x8xf32, #tpu.memory_space<vmem>>, vector<8x8xf32>
    %c16 = arith.constant 16 : index
    %c0_2 = arith.constant 0 : index
    %2 = vector.load %arg1[%c16, %c0_2] : memref<48x8xf32, #tpu.memory_space<vmem>>, vector<8x8xf32>
    %c24 = arith.constant 24 : index
    %c0_3 = arith.constant 0 : index
    %3 = vector.load %arg1[%c24, %c0_3] : memref<48x8xf32, #tpu.memory_space<vmem>>, vector<8x8xf32>
    %c32 = arith.constant 32 : index
    %c0_4 = arith.constant 0 : index
    %4 = vector.load %arg1[%c32, %c0_4] : memref<48x8xf32, #tpu.memory_space<vmem>>, vector<8x8xf32>
    %c40 = arith.constant 40 : index
    %c0_5 = arith.constant 0 : index
    %5 = vector.load %arg1[%c40, %c0_5] : memref<48x8xf32, #tpu.memory_space<vmem>>, vector<1x8xf32>
    %c41 = arith.constant 41 : index
    %c0_6 = arith.constant 0 : index
    %6 = vector.load %arg1[%c41, %c0_6] : memref<48x8xf32, #tpu.memory_space<vmem>>, vector<1x8xf32>
    %7 = vector.shape_cast %6 : vector<1x8xf32> to vector<1x8xf32>
    %8 = vector.broadcast %7 : vector<1x8xf32> to vector<2x8xf32>
    %c42 = arith.constant 42 : index
    %c0_7 = arith.constant 0 : index
    %9 = vector.load %arg1[%c42, %c0_7] : memref<48x8xf32, #tpu.memory_space<vmem>>, vector<1x8xf32>
    %10 = vector.shape_cast %9 : vector<1x8xf32> to vector<1x8xf32>
    %11 = vector.broadcast %10 : vector<1x8xf32> to vector<2x8xf32>
    %c43 = arith.constant 43 : index
    %c0_8 = arith.constant 0 : index
    %12 = vector.load %arg1[%c43, %c0_8] : memref<48x8xf32, #tpu.memory_space<vmem>>, vector<1x8xf32>
    %13 = vector.shape_cast %12 : vector<1x8xf32> to vector<1x8xf32>
    %14 = vector.broadcast %13 : vector<1x8xf32> to vector<2x8xf32>
    %c44 = arith.constant 44 : index
    %c0_9 = arith.constant 0 : index
    %15 = vector.load %arg1[%c44, %c0_9] : memref<48x8xf32, #tpu.memory_space<vmem>>, vector<1x8xf32>
    %c45 = arith.constant 45 : index
    %c0_10 = arith.constant 0 : index
    %16 = vector.load %arg1[%c45, %c0_10] : memref<48x8xf32, #tpu.memory_space<vmem>>, vector<1x1xf32>
    %c0_11 = arith.constant 0 : index
    %c0_12 = arith.constant 0 : index
    %c0_13 = arith.constant 0 : index
    %17 = vector.load %arg0[%c0_11, %c0_12, %c0_13] : memref<2x8x1xf32, #tpu.memory_space<vmem>>, vector<2x8x1xf32>
    %18 = vector.shape_cast %5 : vector<1x8xf32> to vector<1x1x8xf32>
    %19 = vector.broadcast %17 : vector<2x8x1xf32> to vector<2x8x8xf32>
    %20 = vector.broadcast %18 : vector<1x1x8xf32> to vector<2x8x8xf32>
    %21 = arith.mulf %19, %20 : vector<2x8x8xf32>
    %22 = vector.extract_strided_slice %21 {offsets = [0, 0, 0], sizes = [2, 1, 8], strides = [1, 1, 1]} : vector<2x8x8xf32> to vector<2x1x8xf32>
    %23 = vector.shape_cast %22 : vector<2x1x8xf32> to vector<2x8xf32>
    %24 = arith.addf %23, %8 : vector<2x8xf32>
    %25 = math.tanh %24 : vector<2x8xf32>
    %cst = arith.constant dense<0.000000e+00> : vector<2x8xf32>
    %26 = tpu.matmul %25, %1, %cst {dimension_numbers = #tpu.dot_dimension_numbers<[1], [0], [0], [1], [0, 0, 1, 1], [], []>} : vector<2x8xf32>, vector<8x8xf32>, vector<2x8xf32> -> vector<2x8xf32>
    %27 = arith.addf %26, %11 : vector<2x8xf32>
    %28 = math.tanh %27 : vector<2x8xf32>
    %cst_14 = arith.constant dense<0.000000e+00> : vector<2x8xf32>
    %29 = tpu.matmul %28, %3, %cst_14 {dimension_numbers = #tpu.dot_dimension_numbers<[1], [0], [0], [1], [0, 0, 1, 1], [], []>} : vector<2x8xf32>, vector<8x8xf32>, vector<2x8xf32> -> vector<2x8xf32>
    %30 = arith.addf %29, %14 : vector<2x8xf32>
    %31 = math.tanh %30 : vector<2x8xf32>
    %cst_15 = arith.constant dense<0.000000e+00> : vector<2x8xf32>
    %32 = tpu.matmul %25, %0, %cst_15 {dimension_numbers = #tpu.dot_dimension_numbers<[1], [0], [0], [1], [0, 0, 1, 1], [], []>} : vector<2x8xf32>, vector<8x8xf32>, vector<2x8xf32> -> vector<2x8xf32>
    %33 = arith.addf %32, %8 : vector<2x8xf32>
    %cst_16 = arith.constant dense<0.000000e+00> : vector<2x8xf32>
    %34 = tpu.matmul %28, %2, %cst_16 {dimension_numbers = #tpu.dot_dimension_numbers<[1], [0], [0], [1], [0, 0, 1, 1], [], []>} : vector<2x8xf32>, vector<8x8xf32>, vector<2x8xf32> -> vector<2x8xf32>
    %35 = arith.addf %34, %11 : vector<2x8xf32>
    %cst_17 = arith.constant dense<0.000000e+00> : vector<2x8xf32>
    %36 = tpu.matmul %31, %4, %cst_17 {dimension_numbers = #tpu.dot_dimension_numbers<[1], [0], [0], [1], [0, 0, 1, 1], [], []>} : vector<2x8xf32>, vector<8x8xf32>, vector<2x8xf32> -> vector<2x8xf32>
    %37 = arith.addf %36, %14 : vector<2x8xf32>
    %38 = vector.extract_strided_slice %21 {offsets = [0, 1, 0], sizes = [2, 1, 8], strides = [1, 1, 1]} : vector<2x8x8xf32> to vector<2x1x8xf32>
    %39 = vector.shape_cast %38 : vector<2x1x8xf32> to vector<2x8xf32>
    %40 = arith.addf %39, %33 : vector<2x8xf32>
    %41 = math.tanh %40 : vector<2x8xf32>
    %cst_18 = arith.constant dense<0.000000e+00> : vector<2x8xf32>
    %42 = tpu.matmul %41, %1, %cst_18 {dimension_numbers = #tpu.dot_dimension_numbers<[1], [0], [0], [1], [0, 0, 1, 1], [], []>} : vector<2x8xf32>, vector<8x8xf32>, vector<2x8xf32> -> vector<2x8xf32>
    %43 = arith.addf %42, %35 : vector<2x8xf32>
    %44 = math.tanh %43 : vector<2x8xf32>
    %cst_19 = arith.constant dense<0.000000e+00> : vector<2x8xf32>
    %45 = tpu.matmul %44, %3, %cst_19 {dimension_numbers = #tpu.dot_dimension_numbers<[1], [0], [0], [1], [0, 0, 1, 1], [], []>} : vector<2x8xf32>, vector<8x8xf32>, vector<2x8xf32> -> vector<2x8xf32>
    %46 = arith.addf %45, %37 : vector<2x8xf32>
    %47 = math.tanh %46 : vector<2x8xf32>
    %cst_20 = arith.constant dense<0.000000e+00> : vector<2x8xf32>
    %48 = tpu.matmul %41, %0, %cst_20 {dimension_numbers = #tpu.dot_dimension_numbers<[1], [0], [0], [1], [0, 0, 1, 1], [], []>} : vector<2x8xf32>, vector<8x8xf32>, vector<2x8xf32> -> vector<2x8xf32>
    %49 = arith.addf %48, %8 : vector<2x8xf32>
    %cst_21 = arith.constant dense<0.000000e+00> : vector<2x8xf32>
    %50 = tpu.matmul %44, %2, %cst_21 {dimension_numbers = #tpu.dot_dimension_numbers<[1], [0], [0], [1], [0, 0, 1, 1], [], []>} : vector<2x8xf32>, vector<8x8xf32>, vector<2x8xf32> -> vector<2x8xf32>
    %51 = arith.addf %50, %11 : vector<2x8xf32>
    %cst_22 = arith.constant dense<0.000000e+00> : vector<2x8xf32>
    %52 = tpu.matmul %47, %4, %cst_22 {dimension_numbers = #tpu.dot_dimension_numbers<[1], [0], [0], [1], [0, 0, 1, 1], [], []>} : vector<2x8xf32>, vector<8x8xf32>, vector<2x8xf32> -> vector<2x8xf32>
    %53 = arith.addf %52, %14 : vector<2x8xf32>
    %54 = vector.extract_strided_slice %21 {offsets = [0, 2, 0], sizes = [2, 1, 8], strides = [1, 1, 1]} : vector<2x8x8xf32> to vector<2x1x8xf32>
    %55 = vector.shape_cast %54 : vector<2x1x8xf32> to vector<2x8xf32>
    %56 = arith.addf %55, %49 : vector<2x8xf32>
    %57 = math.tanh %56 : vector<2x8xf32>
    %cst_23 = arith.constant dense<0.000000e+00> : vector<2x8xf32>
    %58 = tpu.matmul %57, %1, %cst_23 {dimension_numbers = #tpu.dot_dimension_numbers<[1], [0], [0], [1], [0, 0, 1, 1], [], []>} : vector<2x8xf32>, vector<8x8xf32>, vector<2x8xf32> -> vector<2x8xf32>
    %59 = arith.addf %58, %51 : vector<2x8xf32>
    %60 = math.tanh %59 : vector<2x8xf32>
    %cst_24 = arith.constant dense<0.000000e+00> : vector<2x8xf32>
    %61 = tpu.matmul %60, %3, %cst_24 {dimension_numbers = #tpu.dot_dimension_numbers<[1], [0], [0], [1], [0, 0, 1, 1], [], []>} : vector<2x8xf32>, vector<8x8xf32>, vector<2x8xf32> -> vector<2x8xf32>
    %62 = arith.addf %61, %53 : vector<2x8xf32>
    %63 = math.tanh %62 : vector<2x8xf32>
    %cst_25 = arith.constant dense<0.000000e+00> : vector<2x8xf32>
    %64 = tpu.matmul %57, %0, %cst_25 {dimension_numbers = #tpu.dot_dimension_numbers<[1], [0], [0], [1], [0, 0, 1, 1], [], []>} : vector<2x8xf32>, vector<8x8xf32>, vector<2x8xf32> -> vector<2x8xf32>
    %65 = arith.addf %64, %8 : vector<2x8xf32>
    %cst_26 = arith.constant dense<0.000000e+00> : vector<2x8xf32>
    %66 = tpu.matmul %60, %2, %cst_26 {dimension_numbers = #tpu.dot_dimension_numbers<[1], [0], [0], [1], [0, 0, 1, 1], [], []>} : vector<2x8xf32>, vector<8x8xf32>, vector<2x8xf32> -> vector<2x8xf32>
    %67 = arith.addf %66, %11 : vector<2x8xf32>
    %cst_27 = arith.constant dense<0.000000e+00> : vector<2x8xf32>
    %68 = tpu.matmul %63, %4, %cst_27 {dimension_numbers = #tpu.dot_dimension_numbers<[1], [0], [0], [1], [0, 0, 1, 1], [], []>} : vector<2x8xf32>, vector<8x8xf32>, vector<2x8xf32> -> vector<2x8xf32>
    %69 = arith.addf %68, %14 : vector<2x8xf32>
    %70 = vector.extract_strided_slice %21 {offsets = [0, 3, 0], sizes = [2, 1, 8], strides = [1, 1, 1]} : vector<2x8x8xf32> to vector<2x1x8xf32>
    %71 = vector.shape_cast %70 : vector<2x1x8xf32> to vector<2x8xf32>
    %72 = arith.addf %71, %65 : vector<2x8xf32>
    %73 = math.tanh %72 : vector<2x8xf32>
    %cst_28 = arith.constant dense<0.000000e+00> : vector<2x8xf32>
    %74 = tpu.matmul %73, %1, %cst_28 {dimension_numbers = #tpu.dot_dimension_numbers<[1], [0], [0], [1], [0, 0, 1, 1], [], []>} : vector<2x8xf32>, vector<8x8xf32>, vector<2x8xf32> -> vector<2x8xf32>
    %75 = arith.addf %74, %67 : vector<2x8xf32>
    %76 = math.tanh %75 : vector<2x8xf32>
    %cst_29 = arith.constant dense<0.000000e+00> : vector<2x8xf32>
    %77 = tpu.matmul %76, %3, %cst_29 {dimension_numbers = #tpu.dot_dimension_numbers<[1], [0], [0], [1], [0, 0, 1, 1], [], []>} : vector<2x8xf32>, vector<8x8xf32>, vector<2x8xf32> -> vector<2x8xf32>
    %78 = arith.addf %77, %69 : vector<2x8xf32>
    %79 = math.tanh %78 : vector<2x8xf32>
    %cst_30 = arith.constant dense<0.000000e+00> : vector<2x8xf32>
    %80 = tpu.matmul %73, %0, %cst_30 {dimension_numbers = #tpu.dot_dimension_numbers<[1], [0], [0], [1], [0, 0, 1, 1], [], []>} : vector<2x8xf32>, vector<8x8xf32>, vector<2x8xf32> -> vector<2x8xf32>
    %81 = arith.addf %80, %8 : vector<2x8xf32>
    %cst_31 = arith.constant dense<0.000000e+00> : vector<2x8xf32>
    %82 = tpu.matmul %76, %2, %cst_31 {dimension_numbers = #tpu.dot_dimension_numbers<[1], [0], [0], [1], [0, 0, 1, 1], [], []>} : vector<2x8xf32>, vector<8x8xf32>, vector<2x8xf32> -> vector<2x8xf32>
    %83 = arith.addf %82, %11 : vector<2x8xf32>
    %cst_32 = arith.constant dense<0.000000e+00> : vector<2x8xf32>
    %84 = tpu.matmul %79, %4, %cst_32 {dimension_numbers = #tpu.dot_dimension_numbers<[1], [0], [0], [1], [0, 0, 1, 1], [], []>} : vector<2x8xf32>, vector<8x8xf32>, vector<2x8xf32> -> vector<2x8xf32>
    %85 = arith.addf %84, %14 : vector<2x8xf32>
    %86 = vector.extract_strided_slice %21 {offsets = [0, 4, 0], sizes = [2, 1, 8], strides = [1, 1, 1]} : vector<2x8x8xf32> to vector<2x1x8xf32>
    %87 = vector.shape_cast %86 : vector<2x1x8xf32> to vector<2x8xf32>
    %88 = arith.addf %87, %81 : vector<2x8xf32>
    %89 = math.tanh %88 : vector<2x8xf32>
    %cst_33 = arith.constant dense<0.000000e+00> : vector<2x8xf32>
    %90 = tpu.matmul %89, %1, %cst_33 {dimension_numbers = #tpu.dot_dimension_numbers<[1], [0], [0], [1], [0, 0, 1, 1], [], []>} : vector<2x8xf32>, vector<8x8xf32>, vector<2x8xf32> -> vector<2x8xf32>
    %91 = arith.addf %90, %83 : vector<2x8xf32>
    %92 = math.tanh %91 : vector<2x8xf32>
    %cst_34 = arith.constant dense<0.000000e+00> : vector<2x8xf32>
    %93 = tpu.matmul %92, %3, %cst_34 {dimension_numbers = #tpu.dot_dimension_numbers<[1], [0], [0], [1], [0, 0, 1, 1], [], []>} : vector<2x8xf32>, vector<8x8xf32>, vector<2x8xf32> -> vector<2x8xf32>
    %94 = arith.addf %93, %85 : vector<2x8xf32>
    %95 = math.tanh %94 : vector<2x8xf32>
    %cst_35 = arith.constant dense<0.000000e+00> : vector<2x8xf32>
    %96 = tpu.matmul %89, %0, %cst_35 {dimension_numbers = #tpu.dot_dimension_numbers<[1], [0], [0], [1], [0, 0, 1, 1], [], []>} : vector<2x8xf32>, vector<8x8xf32>, vector<2x8xf32> -> vector<2x8xf32>
    %97 = arith.addf %96, %8 : vector<2x8xf32>
    %cst_36 = arith.constant dense<0.000000e+00> : vector<2x8xf32>
    %98 = tpu.matmul %92, %2, %cst_36 {dimension_numbers = #tpu.dot_dimension_numbers<[1], [0], [0], [1], [0, 0, 1, 1], [], []>} : vector<2x8xf32>, vector<8x8xf32>, vector<2x8xf32> -> vector<2x8xf32>
    %99 = arith.addf %98, %11 : vector<2x8xf32>
    %cst_37 = arith.constant dense<0.000000e+00> : vector<2x8xf32>
    %100 = tpu.matmul %95, %4, %cst_37 {dimension_numbers = #tpu.dot_dimension_numbers<[1], [0], [0], [1], [0, 0, 1, 1], [], []>} : vector<2x8xf32>, vector<8x8xf32>, vector<2x8xf32> -> vector<2x8xf32>
    %101 = arith.addf %100, %14 : vector<2x8xf32>
    %102 = vector.extract_strided_slice %21 {offsets = [0, 5, 0], sizes = [2, 1, 8], strides = [1, 1, 1]} : vector<2x8x8xf32> to vector<2x1x8xf32>
    %103 = vector.shape_cast %102 : vector<2x1x8xf32> to vector<2x8xf32>
    %104 = arith.addf %103, %97 : vector<2x8xf32>
    %105 = math.tanh %104 : vector<2x8xf32>
    %cst_38 = arith.constant dense<0.000000e+00> : vector<2x8xf32>
    %106 = tpu.matmul %105, %1, %cst_38 {dimension_numbers = #tpu.dot_dimension_numbers<[1], [0], [0], [1], [0, 0, 1, 1], [], []>} : vector<2x8xf32>, vector<8x8xf32>, vector<2x8xf32> -> vector<2x8xf32>
    %107 = arith.addf %106, %99 : vector<2x8xf32>
    %108 = math.tanh %107 : vector<2x8xf32>
    %cst_39 = arith.constant dense<0.000000e+00> : vector<2x8xf32>
    %109 = tpu.matmul %108, %3, %cst_39 {dimension_numbers = #tpu.dot_dimension_numbers<[1], [0], [0], [1], [0, 0, 1, 1], [], []>} : vector<2x8xf32>, vector<8x8xf32>, vector<2x8xf32> -> vector<2x8xf32>
    %110 = arith.addf %109, %101 : vector<2x8xf32>
    %111 = math.tanh %110 : vector<2x8xf32>
    %cst_40 = arith.constant dense<0.000000e+00> : vector<2x8xf32>
    %112 = tpu.matmul %105, %0, %cst_40 {dimension_numbers = #tpu.dot_dimension_numbers<[1], [0], [0], [1], [0, 0, 1, 1], [], []>} : vector<2x8xf32>, vector<8x8xf32>, vector<2x8xf32> -> vector<2x8xf32>
    %113 = arith.addf %112, %8 : vector<2x8xf32>
    %cst_41 = arith.constant dense<0.000000e+00> : vector<2x8xf32>
    %114 = tpu.matmul %108, %2, %cst_41 {dimension_numbers = #tpu.dot_dimension_numbers<[1], [0], [0], [1], [0, 0, 1, 1], [], []>} : vector<2x8xf32>, vector<8x8xf32>, vector<2x8xf32> -> vector<2x8xf32>
    %115 = arith.addf %114, %11 : vector<2x8xf32>
    %cst_42 = arith.constant dense<0.000000e+00> : vector<2x8xf32>
    %116 = tpu.matmul %111, %4, %cst_42 {dimension_numbers = #tpu.dot_dimension_numbers<[1], [0], [0], [1], [0, 0, 1, 1], [], []>} : vector<2x8xf32>, vector<8x8xf32>, vector<2x8xf32> -> vector<2x8xf32>
    %117 = arith.addf %116, %14 : vector<2x8xf32>
    %118 = vector.extract_strided_slice %21 {offsets = [0, 6, 0], sizes = [2, 1, 8], strides = [1, 1, 1]} : vector<2x8x8xf32> to vector<2x1x8xf32>
    %119 = vector.shape_cast %118 : vector<2x1x8xf32> to vector<2x8xf32>
    %120 = arith.addf %119, %113 : vector<2x8xf32>
    %121 = math.tanh %120 : vector<2x8xf32>
    %cst_43 = arith.constant dense<0.000000e+00> : vector<2x8xf32>
    %122 = tpu.matmul %121, %1, %cst_43 {dimension_numbers = #tpu.dot_dimension_numbers<[1], [0], [0], [1], [0, 0, 1, 1], [], []>} : vector<2x8xf32>, vector<8x8xf32>, vector<2x8xf32> -> vector<2x8xf32>
    %123 = arith.addf %122, %115 : vector<2x8xf32>
    %124 = math.tanh %123 : vector<2x8xf32>
    %cst_44 = arith.constant dense<0.000000e+00> : vector<2x8xf32>
    %125 = tpu.matmul %124, %3, %cst_44 {dimension_numbers = #tpu.dot_dimension_numbers<[1], [0], [0], [1], [0, 0, 1, 1], [], []>} : vector<2x8xf32>, vector<8x8xf32>, vector<2x8xf32> -> vector<2x8xf32>
    %126 = arith.addf %125, %117 : vector<2x8xf32>
    %127 = math.tanh %126 : vector<2x8xf32>
    %cst_45 = arith.constant dense<0.000000e+00> : vector<2x8xf32>
    %128 = tpu.matmul %121, %0, %cst_45 {dimension_numbers = #tpu.dot_dimension_numbers<[1], [0], [0], [1], [0, 0, 1, 1], [], []>} : vector<2x8xf32>, vector<8x8xf32>, vector<2x8xf32> -> vector<2x8xf32>
    %129 = arith.addf %128, %8 : vector<2x8xf32>
    %cst_46 = arith.constant dense<0.000000e+00> : vector<2x8xf32>
    %130 = tpu.matmul %124, %2, %cst_46 {dimension_numbers = #tpu.dot_dimension_numbers<[1], [0], [0], [1], [0, 0, 1, 1], [], []>} : vector<2x8xf32>, vector<8x8xf32>, vector<2x8xf32> -> vector<2x8xf32>
    %131 = arith.addf %130, %11 : vector<2x8xf32>
    %cst_47 = arith.constant dense<0.000000e+00> : vector<2x8xf32>
    %132 = tpu.matmul %127, %4, %cst_47 {dimension_numbers = #tpu.dot_dimension_numbers<[1], [0], [0], [1], [0, 0, 1, 1], [], []>} : vector<2x8xf32>, vector<8x8xf32>, vector<2x8xf32> -> vector<2x8xf32>
    %133 = arith.addf %132, %14 : vector<2x8xf32>
    %134 = vector.extract_strided_slice %21 {offsets = [0, 7, 0], sizes = [2, 1, 8], strides = [1, 1, 1]} : vector<2x8x8xf32> to vector<2x1x8xf32>
    %135 = vector.shape_cast %134 : vector<2x1x8xf32> to vector<2x8xf32>
    %136 = arith.addf %135, %129 : vector<2x8xf32>
    %137 = math.tanh %136 : vector<2x8xf32>
    %cst_48 = arith.constant dense<0.000000e+00> : vector<2x8xf32>
    %138 = tpu.matmul %137, %1, %cst_48 {dimension_numbers = #tpu.dot_dimension_numbers<[1], [0], [0], [1], [0, 0, 1, 1], [], []>} : vector<2x8xf32>, vector<8x8xf32>, vector<2x8xf32> -> vector<2x8xf32>
    %139 = arith.addf %138, %131 : vector<2x8xf32>
    %140 = math.tanh %139 : vector<2x8xf32>
    %cst_49 = arith.constant dense<0.000000e+00> : vector<2x8xf32>
    %141 = tpu.matmul %140, %3, %cst_49 {dimension_numbers = #tpu.dot_dimension_numbers<[1], [0], [0], [1], [0, 0, 1, 1], [], []>} : vector<2x8xf32>, vector<8x8xf32>, vector<2x8xf32> -> vector<2x8xf32>
    %142 = arith.addf %141, %133 : vector<2x8xf32>
    %143 = math.tanh %142 : vector<2x8xf32>
    %cst_50 = arith.constant dense<0.000000e+00> : vector<2xf32>
    %144 = vector.multi_reduction <add>, %143, %cst_50 [1] : vector<2x8xf32> to vector<2xf32>
    %145 = vector.shape_cast %144 : vector<2xf32> to vector<2x1xf32>
    %cst_51 = arith.constant 8.000000e+00 : f32
    %146 = vector.broadcast %cst_51 : f32 to vector<2x1xf32>
    %147 = arith.divf %145, %146 : vector<2x1xf32>
    %148 = vector.broadcast %147 : vector<2x1xf32> to vector<2x8xf32>
    %149 = arith.subf %143, %148 : vector<2x8xf32>
    %150 = arith.mulf %149, %149 : vector<2x8xf32>
    %cst_52 = arith.constant dense<0.000000e+00> : vector<2xf32>
    %151 = vector.multi_reduction <add>, %150, %cst_52 [1] : vector<2x8xf32> to vector<2xf32>
    %152 = vector.shape_cast %151 : vector<2xf32> to vector<2x1xf32>
    %cst_53 = arith.constant 8.000000e+00 : f32
    %153 = vector.broadcast %cst_53 : f32 to vector<2x1xf32>
    %154 = arith.divf %152, %153 : vector<2x1xf32>
    %155 = vector.broadcast %147 : vector<2x1xf32> to vector<2x8xf32>
    %156 = arith.subf %143, %155 : vector<2x8xf32>
    %cst_54 = arith.constant 9.99999974E-6 : f32
    %157 = vector.broadcast %cst_54 : f32 to vector<2x1xf32>
    %158 = arith.addf %154, %157 : vector<2x1xf32>
    %159 = math.rsqrt %158 : vector<2x1xf32>
    %160 = vector.broadcast %159 : vector<2x1xf32> to vector<2x8xf32>
    %161 = arith.mulf %156, %160 : vector<2x8xf32>
    %162 = vector.broadcast %15 : vector<1x8xf32> to vector<2x8xf32>
    %163 = arith.mulf %161, %162 : vector<2x8xf32>
    %cst_55 = arith.constant dense<0.000000e+00> : vector<2xf32>
    %164 = vector.multi_reduction <add>, %163, %cst_55 [1] : vector<2x8xf32> to vector<2xf32>
    %165 = vector.shape_cast %164 : vector<2xf32> to vector<2x1xf32>
    %166 = vector.broadcast %16 : vector<1x1xf32> to vector<2x1xf32>
    %167 = arith.addf %165, %166 : vector<2x1xf32>
    %c0_56 = arith.constant 0 : index
    %c0_57 = arith.constant 0 : index
    %168 = vector.load %arg2[%c0_56, %c0_57] : memref<2x1xf32, #tpu.memory_space<vmem>>, vector<2x1xf32>
    tpu.vector_store %arg2[%c0_56, %c0_57], %167 {strides = array<i32>} : memref<2x1xf32, #tpu.memory_space<vmem>>, vector<2x1xf32>,
    return
  }
}

</mosaic_0001>

<bundles_post_ra>
// kernel: tpu_custom_call.1
= control target key start
LH: loop header
LB: loop body
LE: loop exit
PB: predicated region body
PF: predicated region fallthrough
CT: control target
= control target key end

     0   :  { %v3231_v0 = vmov 0   ;;  %v3232_v4 = vmov 0.0   ;;  %vm3233_vm0 = vmmov 0   ;;  %vm59_vm1 = vcmask 1041409   ;;  %s3548_s0 = inlined_call_operand.vmem [shape: f32[2,8,1], index: 0, kind: input, shape index: {}]   ;;  %s3549_s1 = inlined_call_operand.vmem [shape: f32[48,8], index: 1, kind: input, shape index: {}]   ;;  %s3550_s2 = inlined_call_operand.vmem [shape: f32[2,1], index: 2, kind: output, shape index: {}]  }
   0x1   :  { %3164 = vset.pattern.permute.xlu0 %v3231_v0  ;;  %v35_v1 = vld [vmem:[%s3548_s0 + $0x8] sm:$0xff]  ;;  %v34_v3 = vld [vmem:[%s3548_s0] sm:$0xff]  ;;  %2976 = vmatprep.subr.mxu0 %v3232_v4  ;;  %vm61_vm2 = vcmask 64512   ;;  %v3301_v18 = vld [vmem:[%s3549_s1 + $0x18] sm:$0xff]  ;;  %vm2825_vm3 = vcmask 58368   ;;  %vm2853_vm4 = vcmask 1024  }
   0x2   :  { %43 = vperm.xlu0 %3164, %v35_v1   ;;  %v3255_v2 = vld [vmem:[%s3549_s1 + $0x8] sm:$0xff]  ;;  %2978 = vmatprep.mubr.msk.f32.mxu0 %vm3233_vm0, %v3232_v4  ;;  %v3287_v16 = vld [vmem:[%s3549_s1] sm:$0xff]  ;;  %v3317_v29 = vld [vmem:[%s3549_s1 + $0x10] sm:$0xff] }
   0x3   :  { %2977 = vmatpush3.msra.mxu0 %v3255_v2  ;;  %2981 = vmatprep.subr.mxu1 %v3232_v4  ;;  %v2862_v5 = vld [vmem:[%s3549_s1 + $0x28] ss:$0 sm:$0xff]  ;;  %v3274_v7 = vld [vmem:[%s3549_s1 + $0x29] ss:$0 sm:$0xff]  ;;  %v3308_v19 = vld [vmem:[%s3549_s1 + $0x2a] ss:$0 sm:$0xff] }
   0x4   :  { %2986 = vmatprep.subr.mxu0 %v3232_v4  ;;  %2983 = vmatprep.mubr.msk.f32.mxu1 %vm3233_vm0, %v3232_v4  ;;  %v3341_v35 = vld [vmem:[%s3549_s1 + $0x20] sm:$0xff]  ;;  %v3350_v36 = vld [vmem:[%s3549_s1 + $0x2b] ss:$0 sm:$0xff] }
   0x5   :  { %2982 = vmatpush3.msra.mxu1 %v3301_v18 }
   0x6   :  { %38 = vperm.xlu0 %3164, %v34_v3   ;;  %2991 = vmatprep.subr.mxu1 %v3232_v4 }
  0x7d   :  { %v44_v6 = vpop.permute.xlu0 %43 }
  0x7e   :  { %v3276_v8 = vmul.f32 %v2862_v5, %v44_v6 }
  0x80   :  { %v53_v9 = vadd.f32 %v3274_v7, %v3276_v8 }
  0x81   :  { %v39_v10 = vpop.permute.xlu0 %38 }
  0x82   :  { %v3280_v11 = vmul.f32 %v2862_v5, %v39_v10  ;;  %3165 = vtanh.f32 %v53_v9 }
  0x84   :  { %v52_v12 = vadd.f32 %v3274_v7, %v3280_v11 }
  0x86   :  { %3167 = vtanh.f32 %v52_v12 }
  0x8f   :  { %v3166_v13 = vpop.eup %3165 }
  0x90   :  { %v58_v14 = vrot.slane %v3166_v13, 7 }
  0x93   :  { %v3168_v15 = vpop.eup %3167 }
  0x94   :  { %v60_v17 = vsel %vm59_vm1, %v58_v14, %v3168_v15 }
  0x95   :  { %2979 = vmatmul.mubr.msk.f32.vlgmr.msra.gmra.mxu0 %vm61_vm2, %v60_v17 }
  0x96   :  { %2987 = vmatpush3.msra.mxu0 %v3287_v16  ;;  %2988 = vmatprep.mubr.msk.f32.mxu0 %vm3233_vm0, %v3232_v4 }
  0x97   :  { %2996 = vmatprep.subr.mxu0 %v3232_v4 }
  0x99   :  { %2989 = vmatmul.mubr.msk.f32.vlgmr.msra.gmra.mxu0 %vm61_vm2, %v60_v17 }
  0x9a   :  { %2998 = vmatprep.mubr.msk.f32.mxu0 %vm3233_vm0, %v3232_v4  ;;  %2997 = vmatpush3.msra.mxu0 %v3341_v35 }
  0x9b   :  { %3006 = vmatprep.subr.mxu0 %v3232_v4 }
 0x155   :  { %v130_v20 = vpop.f32.mrf.mxu0 }
 0x156   :  { %v131_v21 = vadd.f32 %v3308_v19, %v130_v20 }
 0x157   :  { %v2980_v22 = vpop.f32.mrf.mxu0 }
 0x158   :  { %3169 = vtanh.f32 %v131_v21 }
 0x159   :  { %v275_v23 = vpop.f32.mrf.mxu0 }
 0x15a   :  { %v276_v24 = vadd.f32 %v3274_v7, %v275_v23 }
 0x15b   :  { %v2990_v25 = vpop.f32.mrf.mxu0 }
 0x15c   :  { %v423_v26 = vrot.slane %v276_v24, 7  ;;  %v427_v28 = vadd.f32 %v276_v24, %v3276_v8 }
 0x15e   :  { %v426_v27 = vadd.f32 %v423_v26, %v3280_v11 }
 0x160   :  { %3171 = vtanh.f32 %v426_v27 }
 0x161   :  { %3173 = vtanh.f32 %v427_v28 }
 0x165   :  { %v3170_v30 = vpop.eup %3169 }
 0x166   :  { %2984 = vmatmul.mubr.msk.f32.vlgmr.msra.gmra.mxu1 %vm61_vm2, %v3170_v30 }
 0x167   :  { %2992 = vmatpush3.msra.mxu1 %v3317_v29  ;;  %2993 = vmatprep.mubr.msk.f32.mxu1 %vm3233_vm0, %v3232_v4 }
 0x168   :  { %3001 = vmatprep.subr.mxu1 %v3232_v4 }
 0x16a   :  { %2994 = vmatmul.mubr.msk.f32.vlgmr.msra.gmra.mxu1 %vm61_vm2, %v3170_v30 }
 0x16b   :  { %3002 = vmatpush3.msra.mxu1 %v3255_v2  ;;  %3003 = vmatprep.mubr.msk.f32.mxu1 %vm3233_vm0, %v3232_v4 }
 0x16c   :  { %3011 = vmatprep.subr.mxu1 %v3232_v4 }
 0x16d   :  { %v3172_v31 = vpop.eup %3171 }
 0x16e   :  { %v432_v32 = vrot.slane %v3172_v31, 1  ;;  %v3174_v33 = vpop.eup %3173 }
 0x170   :  { %v433_v34 = vsel %vm59_vm1, %v3174_v33, %v432_v32 }
 0x171   :  { %3004 = vmatmul.mubr.msk.f32.vlgmr.msra.gmra.mxu1 %vm61_vm2, %v433_v34 }
 0x172   :  { %3012 = vmatpush3.msra.mxu1 %v3287_v16  ;;  %3013 = vmatprep.mubr.msk.f32.mxu1 %vm3233_vm0, %v3232_v4 }
 0x173   :  { %3021 = vmatprep.subr.mxu1 %v3232_v4 }
 0x175   :  { %3014 = vmatmul.mubr.msk.f32.vlgmr.msra.gmra.mxu1 %vm61_vm2, %v433_v34 }
 0x176   :  { %3023 = vmatprep.mubr.msk.f32.mxu1 %vm3233_vm0, %v3232_v4  ;;  %3022 = vmatpush3.msra.mxu1 %v3341_v35 }
 0x177   :  { %3031 = vmatprep.subr.mxu1 %v3232_v4 }
 0x226   :  { %v204_v37 = vpop.f32.mrf.mxu1 }
 0x227   :  { %v205_v38 = vadd.f32 %v3350_v36, %v204_v37 }
 0x228   :  { %v2985_v39 = vpop.f32.mrf.mxu1 }
 0x229   :  { %3175 = vtanh.f32 %v205_v38 }
 0x22a   :  { %v345_v40 = vpop.f32.mrf.mxu1 }
 0x22b   :  { %v346_v42 = vadd.f32 %v3308_v19, %v345_v40 }
 0x22c   :  { %v2995_v41 = vpop.f32.mrf.mxu1 }
 0x231   :  { %v502_v43 = vpop.f32.mrf.mxu1 }
 0x232   :  { %v503_v44 = vadd.f32 %v502_v43, %v346_v42 }
 0x233   :  { %v3005_v45 = vpop.f32.mrf.mxu1 }
 0x234   :  { %3177 = vtanh.f32 %v503_v44 }
 0x235   :  { %v647_v46 = vpop.f32.mrf.mxu1 }
 0x236   :  { %v3176_v47 = vpop.eup %3175  ;;  %v648_v48 = vadd.f32 %v3274_v7, %v647_v46 }
 0x237   :  { %2999 = vmatmul.mubr.msk.f32.vlgmr.msra.gmra.mxu0 %vm61_vm2, %v3176_v47  ;;  %v3015_v49 = vpop.f32.mrf.mxu1 }
 0x238   :  { %v795_v50 = vrot.slane %v648_v48, 6  ;;  %v796_v51 = vrot.slane %v648_v48, 7  ;;  %3007 = vmatpush3.msra.mxu0 %v3301_v18  ;;  %3008 = vmatprep.mubr.msk.f32.mxu0 %vm3233_vm0, %v3232_v4 }
 0x239   :  { %3016 = vmatprep.subr.mxu0 %v3232_v4 }
 0x23a   :  { %v799_v52 = vadd.f32 %v795_v50, %v3280_v11  ;;  %v800_v53 = vadd.f32 %v796_v51, %v3276_v8 }
 0x23c   :  { %3179 = vtanh.f32 %v799_v52 }
 0x23d   :  { %3181 = vtanh.f32 %v800_v53 }
 0x241   :  { %v3178_v54 = vpop.eup %3177 }
 0x242   :  { %3009 = vmatmul.mubr.msk.f32.vlgmr.msra.gmra.mxu0 %vm61_vm2, %v3178_v54 }
 0x243   :  { %3017 = vmatpush3.msra.mxu0 %v3317_v29  ;;  %3018 = vmatprep.mubr.msk.f32.mxu0 %vm3233_vm0, %v3232_v4 }
 0x244   :  { %3026 = vmatprep.subr.mxu0 %v3232_v4 }
 0x246   :  { %3019 = vmatmul.mubr.msk.f32.vlgmr.msra.gmra.mxu0 %vm61_vm2, %v3178_v54 }
 0x247   :  { %3027 = vmatpush3.msra.mxu0 %v3255_v2  ;;  %3028 = vmatprep.mubr.msk.f32.mxu0 %vm3233_vm0, %v3232_v4 }
 0x248   :  { %3036 = vmatprep.subr.mxu0 %v3232_v4 }
 0x249   :  { %v3180_v55 = vpop.eup %3179 }
 0x24a   :  { %v3182_v56 = vpop.eup %3181  ;;  %v805_v57 = vrot.slane %v3180_v55, 2 }
 0x24b   :  { %v806_v58 = vrot.slane %v3182_v56, 1 }
 0x24d   :  { %v807_v59 = vsel %vm59_vm1, %v806_v58, %v805_v57 }
 0x24e   :  { %3029 = vmatmul.mubr.msk.f32.vlgmr.msra.gmra.mxu0 %vm61_vm2, %v807_v59 }
 0x24f   :  { %3037 = vmatpush3.msra.mxu0 %v3287_v16  ;;  %3038 = vmatprep.mubr.msk.f32.mxu0 %vm3233_vm0, %v3232_v4 }
 0x250   :  { %3046 = vmatprep.subr.mxu0 %v3232_v4 }
 0x252   :  { %3039 = vmatmul.mubr.msk.f32.vlgmr.msra.gmra.mxu0 %vm61_vm2, %v807_v59 }
 0x253   :  { %3047 = vmatpush3.msra.mxu0 %v3341_v35  ;;  %3048 = vmatprep.mubr.msk.f32.mxu0 %vm3233_vm0, %v3232_v4 }
 0x254   :  { %3056 = vmatprep.subr.mxu0 %v3232_v4 }
 0x2f7   :  { %v418_v60 = vpop.f32.mrf.mxu0 }
 0x2f8   :  { %v419_v62 = vadd.f32 %v3350_v36, %v418_v60 }
 0x2f9   :  { %v3000_v61 = vpop.f32.mrf.mxu0 }
 0x302   :  { %v576_v63 = vpop.f32.mrf.mxu0 }
 0x303   :  { %v577_v0 = vadd.f32 %v576_v63, %v419_v62 }
 0x304   :  { %v3010_v1 = vpop.f32.mrf.mxu0 }
 0x305   :  { %3183 = vtanh.f32 %v577_v0 }
 0x306   :  { %v717_v3 = vpop.f32.mrf.mxu0 }
 0x307   :  { %v718_v6 = vadd.f32 %v3308_v19, %v717_v3 }
 0x308   :  { %v3020_v5 = vpop.f32.mrf.mxu0 }
 0x30e   :  { %v876_v9 = vpop.f32.mrf.mxu0 }
 0x30f   :  { %v877_v10 = vadd.f32 %v876_v9, %v718_v6 }
 0x310   :  { %v3030_v12 = vpop.f32.mrf.mxu0 }
 0x311   :  { %3185 = vtanh.f32 %v877_v10 }
 0x312   :  { %v3184_v13 = vpop.eup %3183  ;;  %v1021_v14 = vpop.f32.mrf.mxu0 }
 0x313   :  { %v1022_v15 = vadd.f32 %v3274_v7, %v1021_v14  ;;  %3024 = vmatmul.mubr.msk.f32.vlgmr.msra.gmra.mxu1 %vm61_vm2, %v3184_v13 }
 0x314   :  { %v3040_v17 = vpop.f32.mrf.mxu0  ;;  %3032 = vmatpush3.msra.mxu1 %v3301_v18  ;;  %3033 = vmatprep.mubr.msk.f32.mxu1 %vm3233_vm0, %v3232_v4 }
 0x315   :  { %v1169_v20 = vrot.slane %v1022_v15, 5  ;;  %v1170_v21 = vrot.slane %v1022_v15, 6  ;;  %3041 = vmatprep.subr.mxu1 %v3232_v4 }
 0x317   :  { %v1173_v22 = vadd.f32 %v1169_v20, %v3280_v11  ;;  %v1174_v23 = vadd.f32 %v1170_v21, %v3276_v8 }
 0x319   :  { %3187 = vtanh.f32 %v1173_v22 }
 0x31a   :  { %3189 = vtanh.f32 %v1174_v23 }
 0x31e   :  { %v3186_v24 = vpop.eup %3185 }
 0x31f   :  { %3034 = vmatmul.mubr.msk.f32.vlgmr.msra.gmra.mxu1 %vm61_vm2, %v3186_v24 }
 0x320   :  { %3042 = vmatpush3.msra.mxu1 %v3317_v29  ;;  %3043 = vmatprep.mubr.msk.f32.mxu1 %vm3233_vm0, %v3232_v4 }
 0x321   :  { %3051 = vmatprep.subr.mxu1 %v3232_v4 }
 0x323   :  { %3044 = vmatmul.mubr.msk.f32.vlgmr.msra.gmra.mxu1 %vm61_vm2, %v3186_v24 }
 0x324   :  { %3052 = vmatpush3.msra.mxu1 %v3255_v2  ;;  %3053 = vmatprep.mubr.msk.f32.mxu1 %vm3233_vm0, %v3232_v4 }
 0x325   :  { %3061 = vmatprep.subr.mxu1 %v3232_v4 }
 0x326   :  { %v3188_v25 = vpop.eup %3187 }
 0x327   :  { %v3190_v26 = vpop.eup %3189  ;;  %v1179_v27 = vrot.slane %v3188_v25, 3 }
 0x328   :  { %v1180_v28 = vrot.slane %v3190_v26, 2 }
 0x32a   :  { %v1181_v30 = vsel %vm59_vm1, %v1180_v28, %v1179_v27 }
 0x32b   :  { %3054 = vmatmul.mubr.msk.f32.vlgmr.msra.gmra.mxu1 %vm61_vm2, %v1181_v30 }
 0x32c   :  { %3062 = vmatpush3.msra.mxu1 %v3287_v16  ;;  %3063 = vmatprep.mubr.msk.f32.mxu1 %vm3233_vm0, %v3232_v4 }
 0x32d   :  { %3071 = vmatprep.subr.mxu1 %v3232_v4 }
 0x32f   :  { %3064 = vmatmul.mubr.msk.f32.vlgmr.msra.gmra.mxu1 %vm61_vm2, %v1181_v30 }
 0x330   :  { %3072 = vmatpush3.msra.mxu1 %v3341_v35  ;;  %3073 = vmatprep.mubr.msk.f32.mxu1 %vm3233_vm0, %v3232_v4 }
 0x331   :  { %3081 = vmatprep.subr.mxu1 %v3232_v4 }
 0x3d3   :  { %v790_v31 = vpop.f32.mrf.mxu1 }
 0x3d4   :  { %v791_v33 = vadd.f32 %v3350_v36, %v790_v31 }
 0x3d5   :  { %v3025_v32 = vpop.f32.mrf.mxu1 }
 0x3df   :  { %v950_v34 = vpop.f32.mrf.mxu1 }
 0x3e0   :  { %v951_v37 = vadd.f32 %v950_v34, %v791_v33 }
 0x3e1   :  { %v3035_v38 = vpop.f32.mrf.mxu1 }
 0x3e2   :  { %3191 = vtanh.f32 %v951_v37 }
 0x3e3   :  { %v1091_v39 = vpop.f32.mrf.mxu1 }
 0x3e4   :  { %v1092_v41 = vadd.f32 %v3308_v19, %v1091_v39 }
 0x3e5   :  { %v3045_v40 = vpop.f32.mrf.mxu1 }
 0x3eb   :  { %v1250_v42 = vpop.f32.mrf.mxu1 }
 0x3ec   :  { %v1251_v43 = vadd.f32 %v1250_v42, %v1092_v41 }
 0x3ed   :  { %v3055_v44 = vpop.f32.mrf.mxu1 }
 0x3ee   :  { %3193 = vtanh.f32 %v1251_v43 }
 0x3ef   :  { %v3192_v45 = vpop.eup %3191  ;;  %v1395_v46 = vpop.f32.mrf.mxu1 }
 0x3f0   :  { %v1396_v47 = vadd.f32 %v3274_v7, %v1395_v46  ;;  %3049 = vmatmul.mubr.msk.f32.vlgmr.msra.gmra.mxu0 %vm61_vm2, %v3192_v45 }
 0x3f1   :  { %v3065_v48 = vpop.f32.mrf.mxu1  ;;  %3057 = vmatpush3.msra.mxu0 %v3301_v18  ;;  %3058 = vmatprep.mubr.msk.f32.mxu0 %vm3233_vm0, %v3232_v4 }
 0x3f2   :  { %v1543_v49 = vrot.slane %v1396_v47, 4  ;;  %v1544_v50 = vrot.slane %v1396_v47, 5  ;;  %3066 = vmatprep.subr.mxu0 %v3232_v4 }
 0x3f4   :  { %v1547_v51 = vadd.f32 %v1543_v49, %v3280_v11  ;;  %v1548_v52 = vadd.f32 %v1544_v50, %v3276_v8 }
 0x3f6   :  { %3195 = vtanh.f32 %v1547_v51 }
 0x3f7   :  { %3197 = vtanh.f32 %v1548_v52 }
 0x3fb   :  { %v3194_v53 = vpop.eup %3193 }
 0x3fc   :  { %3059 = vmatmul.mubr.msk.f32.vlgmr.msra.gmra.mxu0 %vm61_vm2, %v3194_v53 }
 0x3fd   :  { %3067 = vmatpush3.msra.mxu0 %v3317_v29  ;;  %3068 = vmatprep.mubr.msk.f32.mxu0 %vm3233_vm0, %v3232_v4 }
 0x3fe   :  { %3076 = vmatprep.subr.mxu0 %v3232_v4 }
 0x400   :  { %3069 = vmatmul.mubr.msk.f32.vlgmr.msra.gmra.mxu0 %vm61_vm2, %v3194_v53 }
 0x401   :  { %3077 = vmatpush3.msra.mxu0 %v3255_v2  ;;  %3078 = vmatprep.mubr.msk.f32.mxu0 %vm3233_vm0, %v3232_v4 }
 0x402   :  { %3086 = vmatprep.subr.mxu0 %v3232_v4 }
 0x403   :  { %v3196_v54 = vpop.eup %3195 }
 0x404   :  { %v3198_v55 = vpop.eup %3197  ;;  %v1553_v56 = vrot.slane %v3196_v54, 4 }
 0x405   :  { %v1554_v57 = vrot.slane %v3198_v55, 3 }
 0x407   :  { %v1555_v58 = vsel %vm59_vm1, %v1554_v57, %v1553_v56 }
 0x408   :  { %3079 = vmatmul.mubr.msk.f32.vlgmr.msra.gmra.mxu0 %vm61_vm2, %v1555_v58 }
 0x409   :  { %3087 = vmatpush3.msra.mxu0 %v3287_v16  ;;  %3088 = vmatprep.mubr.msk.f32.mxu0 %vm3233_vm0, %v3232_v4 }
 0x40a   :  { %3096 = vmatprep.subr.mxu0 %v3232_v4 }
 0x40c   :  { %3089 = vmatmul.mubr.msk.f32.vlgmr.msra.gmra.mxu0 %vm61_vm2, %v1555_v58 }
 0x40d   :  { %3097 = vmatpush3.msra.mxu0 %v3341_v35  ;;  %3098 = vmatprep.mubr.msk.f32.mxu0 %vm3233_vm0, %v3232_v4 }
 0x40e   :  { %3106 = vmatprep.subr.mxu0 %v3232_v4 }
 0x4b0   :  { %v1164_v59 = vpop.f32.mrf.mxu0 }
 0x4b1   :  { %v1165_v61 = vadd.f32 %v3350_v36, %v1164_v59 }
 0x4b2   :  { %v3050_v60 = vpop.f32.mrf.mxu0 }
 0x4bc   :  { %v1324_v62 = vpop.f32.mrf.mxu0 }
 0x4bd   :  { %v1325_v63 = vadd.f32 %v1324_v62, %v1165_v61 }
 0x4be   :  { %v3060_v0 = vpop.f32.mrf.mxu0 }
 0x4bf   :  { %3199 = vtanh.f32 %v1325_v63 }
 0x4c0   :  { %v1465_v1 = vpop.f32.mrf.mxu0 }
 0x4c1   :  { %v1466_v5 = vadd.f32 %v3308_v19, %v1465_v1 }
 0x4c2   :  { %v3070_v3 = vpop.f32.mrf.mxu0 }
 0x4c8   :  { %v1624_v6 = vpop.f32.mrf.mxu0 }
 0x4c9   :  { %v1625_v9 = vadd.f32 %v1624_v6, %v1466_v5 }
 0x4ca   :  { %v3080_v10 = vpop.f32.mrf.mxu0 }
 0x4cb   :  { %3201 = vtanh.f32 %v1625_v9 }
 0x4cc   :  { %v3200_v12 = vpop.eup %3199  ;;  %v1769_v13 = vpop.f32.mrf.mxu0 }
 0x4cd   :  { %v1770_v14 = vadd.f32 %v3274_v7, %v1769_v13  ;;  %3074 = vmatmul.mubr.msk.f32.vlgmr.msra.gmra.mxu1 %vm61_vm2, %v3200_v12 }
 0x4ce   :  { %v3090_v15 = vpop.f32.mrf.mxu0  ;;  %3082 = vmatpush3.msra.mxu1 %v3301_v18  ;;  %3083 = vmatprep.mubr.msk.f32.mxu1 %vm3233_vm0, %v3232_v4 }
 0x4cf   :  { %v1917_v17 = vrot.slane %v1770_v14, 3  ;;  %v1918_v20 = vrot.slane %v1770_v14, 4  ;;  %3091 = vmatprep.subr.mxu1 %v3232_v4 }
 0x4d1   :  { %v1921_v21 = vadd.f32 %v1917_v17, %v3280_v11  ;;  %v1922_v22 = vadd.f32 %v1918_v20, %v3276_v8 }
 0x4d3   :  { %3203 = vtanh.f32 %v1921_v21 }
 0x4d4   :  { %3205 = vtanh.f32 %v1922_v22 }
 0x4d8   :  { %v3202_v23 = vpop.eup %3201 }
 0x4d9   :  { %3084 = vmatmul.mubr.msk.f32.vlgmr.msra.gmra.mxu1 %vm61_vm2, %v3202_v23 }
 0x4da   :  { %3092 = vmatpush3.msra.mxu1 %v3317_v29  ;;  %3093 = vmatprep.mubr.msk.f32.mxu1 %vm3233_vm0, %v3232_v4 }
 0x4db   :  { %3101 = vmatprep.subr.mxu1 %v3232_v4 }
 0x4dd   :  { %3094 = vmatmul.mubr.msk.f32.vlgmr.msra.gmra.mxu1 %vm61_vm2, %v3202_v23 }
 0x4de   :  { %3102 = vmatpush3.msra.mxu1 %v3255_v2  ;;  %3103 = vmatprep.mubr.msk.f32.mxu1 %vm3233_vm0, %v3232_v4 }
 0x4df   :  { %3111 = vmatprep.subr.mxu1 %v3232_v4 }
 0x4e0   :  { %v3204_v24 = vpop.eup %3203 }
 0x4e1   :  { %v3206_v25 = vpop.eup %3205  ;;  %v1927_v26 = vrot.slane %v3204_v24, 5 }
 0x4e2   :  { %v1928_v27 = vrot.slane %v3206_v25, 4 }
 0x4e4   :  { %v1929_v28 = vsel %vm59_vm1, %v1928_v27, %v1927_v26 }
 0x4e5   :  { %3104 = vmatmul.mubr.msk.f32.vlgmr.msra.gmra.mxu1 %vm61_vm2, %v1929_v28 }
 0x4e6   :  { %3112 = vmatpush3.msra.mxu1 %v3287_v16  ;;  %3113 = vmatprep.mubr.msk.f32.mxu1 %vm3233_vm0, %v3232_v4 }
 0x4e7   :  { %3121 = vmatprep.subr.mxu1 %v3232_v4 }
 0x4e9   :  { %3114 = vmatmul.mubr.msk.f32.vlgmr.msra.gmra.mxu1 %vm61_vm2, %v1929_v28 }
 0x4ea   :  { %3122 = vmatpush3.msra.mxu1 %v3341_v35  ;;  %3123 = vmatprep.mubr.msk.f32.mxu1 %vm3233_vm0, %v3232_v4 }
 0x4eb   :  { %3131 = vmatprep.subr.mxu1 %v3232_v4 }
 0x58d   :  { %v1538_v30 = vpop.f32.mrf.mxu1 }
 0x58e   :  { %v1539_v32 = vadd.f32 %v3350_v36, %v1538_v30 }
 0x58f   :  { %v3075_v31 = vpop.f32.mrf.mxu1 }
 0x599   :  { %v1698_v33 = vpop.f32.mrf.mxu1 }
 0x59a   :  { %v1699_v34 = vadd.f32 %v1698_v33, %v1539_v32 }
 0x59b   :  { %v3085_v37 = vpop.f32.mrf.mxu1 }
 0x59c   :  { %3207 = vtanh.f32 %v1699_v34 }
 0x59d   :  { %v1839_v38 = vpop.f32.mrf.mxu1 }
 0x59e   :  { %v1840_v40 = vadd.f32 %v3308_v19, %v1839_v38 }
 0x59f   :  { %v3095_v39 = vpop.f32.mrf.mxu1 }
 0x5a5   :  { %v1998_v41 = vpop.f32.mrf.mxu1 }
 0x5a6   :  { %v1999_v42 = vadd.f32 %v1998_v41, %v1840_v40 }
 0x5a7   :  { %v3105_v43 = vpop.f32.mrf.mxu1 }
 0x5a8   :  { %3209 = vtanh.f32 %v1999_v42 }
 0x5a9   :  { %v3208_v44 = vpop.eup %3207  ;;  %v2143_v45 = vpop.f32.mrf.mxu1 }
 0x5aa   :  { %v2144_v46 = vadd.f32 %v3274_v7, %v2143_v45  ;;  %3099 = vmatmul.mubr.msk.f32.vlgmr.msra.gmra.mxu0 %vm61_vm2, %v3208_v44 }
 0x5ab   :  { %v3115_v47 = vpop.f32.mrf.mxu1  ;;  %3107 = vmatpush3.msra.mxu0 %v3301_v18  ;;  %3108 = vmatprep.mubr.msk.f32.mxu0 %vm3233_vm0, %v3232_v4 }
 0x5ac   :  { %v2291_v48 = vrot.slane %v2144_v46, 2  ;;  %v2292_v49 = vrot.slane %v2144_v46, 3  ;;  %3116 = vmatprep.subr.mxu0 %v3232_v4 }
 0x5ae   :  { %v2295_v50 = vadd.f32 %v2291_v48, %v3280_v11  ;;  %v2296_v51 = vadd.f32 %v2292_v49, %v3276_v8 }
 0x5b0   :  { %3211 = vtanh.f32 %v2295_v50 }
 0x5b1   :  { %3213 = vtanh.f32 %v2296_v51  ;;  %v2900_v51 = vld [vmem:[%s3549_s1 + $0x2c] ss:$0 sm:$0xff] }
 0x5b5   :  { %v3210_v52 = vpop.eup %3209 }
 0x5b6   :  { %3109 = vmatmul.mubr.msk.f32.vlgmr.msra.gmra.mxu0 %vm61_vm2, %v3210_v52 }
 0x5b7   :  { %3117 = vmatpush3.msra.mxu0 %v3317_v29  ;;  %3118 = vmatprep.mubr.msk.f32.mxu0 %vm3233_vm0, %v3232_v4 }
 0x5b8   :  { %3126 = vmatprep.subr.mxu0 %v3232_v4 }
 0x5ba   :  { %3119 = vmatmul.mubr.msk.f32.vlgmr.msra.gmra.mxu0 %vm61_vm2, %v3210_v52 }
 0x5bb   :  { %3127 = vmatpush3.msra.mxu0 %v3255_v2  ;;  %3128 = vmatprep.mubr.msk.f32.mxu0 %vm3233_vm0, %v3232_v4 }
 0x5bc   :  { %3136 = vmatprep.subr.mxu0 %v3232_v4 }
 0x5bd   :  { %v3212_v53 = vpop.eup %3211 }
 0x5be   :  { %v3214_v54 = vpop.eup %3213  ;;  %v2301_v55 = vrot.slane %v3212_v53, 6 }
 0x5bf   :  { %v2302_v56 = vrot.slane %v3214_v54, 5 }
 0x5c1   :  { %v2303_v57 = vsel %vm59_vm1, %v2302_v56, %v2301_v55  ;;  %v2901_v55 = vld [vmem:[%s3549_s1 + $0x2d] ss:$0 sm:$0xff] }
 0x5c2   :  { %3129 = vmatmul.mubr.msk.f32.vlgmr.msra.gmra.mxu0 %vm61_vm2, %v2303_v57 }
 0x5c3   :  { %3137 = vmatpush3.msra.mxu0 %v3287_v16  ;;  %3138 = vmatprep.mubr.msk.f32.mxu0 %vm3233_vm0, %v3232_v4 }
 0x5c4   :  { %3146 = vmatprep.subr.mxu0 %v3232_v4 }
 0x5c6   :  { %3139 = vmatmul.mubr.msk.f32.vlgmr.msra.gmra.mxu0 %vm61_vm2, %v2303_v57 }
 0x5c7   :  { %3147 = vmatpush3.msra.mxu0 %v3341_v35  ;;  %3148 = vmatprep.mubr.msk.f32.mxu0 %vm3233_vm0, %v3232_v4 }
 0x5c8   :  { %3156 = vmatprep.subr.mxu0 %v3232_v4 }
 0x66a   :  { %v1912_v58 = vpop.f32.mrf.mxu0 }
 0x66b   :  { %v1913_v60 = vadd.f32 %v3350_v36, %v1912_v58 }
 0x66c   :  { %v3100_v59 = vpop.f32.mrf.mxu0 }
 0x676   :  { %v2072_v61 = vpop.f32.mrf.mxu0 }
 0x677   :  { %v2073_v16 = vadd.f32 %v2072_v61, %v1913_v60 }
 0x678   :  { %v3110_v62 = vpop.f32.mrf.mxu0 }
 0x679   :  { %3215 = vtanh.f32 %v2073_v16 }
 0x67a   :  { %v2213_v63 = vpop.f32.mrf.mxu0 }
 0x67b   :  { %v2214_v1 = vadd.f32 %v3308_v19, %v2213_v63 }
 0x67c   :  { %v3120_v0 = vpop.f32.mrf.mxu0 }
 0x682   :  { %v2372_v3 = vpop.f32.mrf.mxu0 }
 0x683   :  { %v2373_v5 = vadd.f32 %v2372_v3, %v2214_v1 }
 0x684   :  { %v3130_v35 = vpop.f32.mrf.mxu0 }
 0x685   :  { %3217 = vtanh.f32 %v2373_v5 }
 0x686   :  { %v3216_v6 = vpop.eup %3215  ;;  %v2517_v9 = vpop.f32.mrf.mxu0 }
 0x687   :  { %v2518_v10 = vadd.f32 %v3274_v7, %v2517_v9  ;;  %3124 = vmatmul.mubr.msk.f32.vlgmr.msra.gmra.mxu1 %vm61_vm2, %v3216_v6 }
 0x688   :  { %v3140_v12 = vpop.f32.mrf.mxu0  ;;  %3132 = vmatpush3.msra.mxu1 %v3301_v18  ;;  %3133 = vmatprep.mubr.msk.f32.mxu1 %vm3233_vm0, %v3232_v4 }
 0x689   :  { %v2665_v13 = vrot.slane %v2518_v10, 1  ;;  %v2666_v14 = vrot.slane %v2518_v10, 2  ;;  %3141 = vmatprep.subr.mxu1 %v3232_v4 }
 0x68b   :  { %v2669_v15 = vadd.f32 %v2665_v13, %v3280_v11  ;;  %v2670_v17 = vadd.f32 %v2666_v14, %v3276_v8 }
 0x68d   :  { %3219 = vtanh.f32 %v2669_v15 }
 0x68e   :  { %3221 = vtanh.f32 %v2670_v17 }
 0x692   :  { %v3218_v20 = vpop.eup %3217 }
 0x693   :  { %3134 = vmatmul.mubr.msk.f32.vlgmr.msra.gmra.mxu1 %vm61_vm2, %v3218_v20 }
 0x694   :  { %3142 = vmatpush3.msra.mxu1 %v3317_v29  ;;  %3143 = vmatprep.mubr.msk.f32.mxu1 %vm3233_vm0, %v3232_v4 }
 0x695   :  { %3151 = vmatprep.subr.mxu1 %v3232_v4 }
 0x697   :  { %3144 = vmatmul.mubr.msk.f32.vlgmr.msra.gmra.mxu1 %vm61_vm2, %v3218_v20 }
 0x698   :  { %3152 = vmatpush3.msra.mxu1 %v3255_v2  ;;  %3153 = vmatprep.mubr.msk.f32.mxu1 %vm3233_vm0, %v3232_v4 }
 0x69a   :  { %v3220_v7 = vpop.eup %3219 }
 0x69b   :  { %v3222_v8 = vpop.eup %3221  ;;  %v2675_v11 = vrot.slane %v3220_v7, 7 }
 0x69c   :  { %v2676_v21 = vrot.slane %v3222_v8, 6 }
 0x69e   :  { %v2677_v22 = vsel %vm59_vm1, %v2676_v21, %v2675_v11 }
 0x69f   :  { %3154 = vmatmul.mubr.msk.f32.vlgmr.msra.gmra.mxu1 %vm61_vm2, %v2677_v22 }
 0x747   :  { %v2286_v29 = vpop.f32.mrf.mxu1 }
 0x748   :  { %v2287_v24 = vadd.f32 %v3350_v36, %v2286_v29 }
 0x749   :  { %v3125_v23 = vpop.f32.mrf.mxu1 }
 0x753   :  { %v2446_v25 = vpop.f32.mrf.mxu1 }
 0x754   :  { %v2447_v26 = vadd.f32 %v2446_v25, %v2287_v24 }
 0x755   :  { %v3135_v27 = vpop.f32.mrf.mxu1 }
 0x756   :  { %3223 = vtanh.f32 %v2447_v26 }
 0x757   :  { %v2587_v2 = vpop.f32.mrf.mxu1 }
 0x758   :  { %v2588_v30 = vadd.f32 %v3308_v19, %v2587_v2 }
 0x759   :  { %v3145_v28 = vpop.f32.mrf.mxu1 }
 0x75f   :  { %v2746_v31 = vpop.f32.mrf.mxu1 }
 0x760   :  { %v2747_v32 = vadd.f32 %v2746_v31, %v2588_v30 }
 0x761   :  { %v3155_v33 = vpop.f32.mrf.mxu1 }
 0x762   :  { %3225 = vtanh.f32 %v2747_v32 }
 0x763   :  { %v3224_v34 = vpop.eup %3223 }
 0x764   :  { %3149 = vmatmul.mubr.msk.f32.vlgmr.msra.gmra.mxu0 %vm61_vm2, %v3224_v34 }
 0x765   :  { %3157 = vmatpush3.msra.mxu0 %v3301_v18  ;;  %3158 = vmatprep.mubr.msk.f32.mxu0 %vm3233_vm0, %v3232_v4 }
 0x76f   :  { %v3226_v37 = vpop.eup %3225 }
 0x770   :  { %3159 = vmatmul.mubr.msk.f32.vlgmr.msra.gmra.mxu0 %vm61_vm2, %v3226_v37 }
 0x824   :  { %v2660_v38 = vpop.f32.mrf.mxu0 }
 0x825   :  { %v2661_v40 = vadd.f32 %v3350_v36, %v2660_v38 }
 0x826   :  { %v3150_v39 = vpop.f32.mrf.mxu0 }
 0x830   :  { %v2820_v19 = vpop.f32.mrf.mxu0 }
 0x831   :  { %v2821_v41 = vadd.f32 %v2820_v19, %v2661_v40 }
 0x832   :  { %v3160_v42 = vpop.f32.mrf.mxu0 }
 0x833   :  { %3227 = vtanh.f32 %v2821_v41 }
 0x840   :  { %v3228_v43 = vpop.eup %3227 }
 0x841   :  { %v2826_v44 = vsel %vm2825_vm3, %v3228_v43, 0.0 }
 0x842   :  { %2827 = vadd.xlane.f32.xlu1 %v2826_v44 }
 0x8cb   :  { %v2828_v18 = vpop.xlane.xlu1 %2827 }
 0x8cc   :  { %v2830_v45 = vmul.f32 0.125, %v2828_v18 }
 0x8ce   :  { %v2831_v46 = vsub.f32 %v3228_v43, %v2830_v45 }
 0x8d0   :  { %v2832_v4 = vmul.f32 %v2831_v46, %v2831_v46 }
 0x8d2   :  { %v2833_v47 = vsel %vm2825_vm3, %v2832_v4, 0.0 }
 0x8d3   :  { %2834 = vadd.xlane.f32.xlu1 %v2833_v47 }
 0x95c   :  { %v2835_v48 = vpop.xlane.xlu1 %2834 }
 0x95d   :  { %v2836_v49 = vmul.f32 0.125, %v2835_v48 }
 0x95f   :  { %v2837_v50 = vadd.f32 1e-05, %v2836_v49 }
 0x961   :  { %3229 = vrsqrt.f32 %v2837_v50 }
 0x96e   :  { %v3230_v36 = vpop.eup %3229 }
 0x96f   :  { %v2839_v52 = vmul.f32 %v3230_v36, %v2831_v46 }
 0x971   :  { %v2844_v53 = vmul.f32 %v2900_v51, %v2839_v52 }
 0x973   :  { %v2845_v54 = vsel %vm2825_vm3, %v2844_v53, 0.0 }
 0x974   :  { %2846 = vadd.xlane.f32.xlu0 %v2845_v54 }
 0x9fd   :  { %v2847_v56 = vpop.xlane.xlu0 %2846 }
 0x9fe   :  { %v2852_v57 = vadd.f32 %v2901_v55, %v2847_v56 }
 0xa00   :  { %2854 = vst.msk [vmem:[%s3550_s2] sm:$0x3] %vm2853_vm4, %v2852_v57 }

</bundles_post_ra>
